<compile_context>
chip_gen: v5e
topology: v5e:2x2
jax: 0.10.0
libtpu: 0.0.40
codegen_flags: <defaults>
</compile_context>

<pallas_src>
import functools

import jax
import jax.numpy as jnp
from jax.experimental import pallas as pl
from jax.experimental.pallas import tpu as pltpu


def _round_up(x, m):
    return (x + m - 1) // m * m


# ---------------------------------------------------------------------------
# Fused Pallas kernel: n_mlp x [ (x @ W_l) * inv_sigma_l + b_l -> ReLU ]
# (W_l already transposed to (in, out) layout by the wrapper.)
# ---------------------------------------------------------------------------
def _style_block_kernel(n_mlp, inv_sigma_ref, x_ref, w_ref, b_ref, o_ref):
    """inv_sigma_ref: (n_mlp,) f32 SMEM (scalar prefetch)
    x_ref: (TB, F) f32 VMEM        w_ref: (n_mlp, F, F) f32 VMEM  (W.T stacked)
    b_ref: (n_mlp, 1, F) f32 VMEM  o_ref: (TB, F) VMEM
    """
    act = x_ref[...].astype(jnp.float32)          # (TB, F), stays resident
    for l in range(n_mlp):                        # static unroll over layers
        # Natural MXU layout: contract act's lane dim with W_l.T's leading dim.
        y = jnp.dot(act, w_ref[l], preferred_element_type=jnp.float32)
        y = y * inv_sigma_ref[l] + b_ref[l]       # f32 epilogue (VALU, hides under MXU)
        act = jnp.maximum(y, 0.0)                 # ReLU activation
    o_ref[...] = act.astype(o_ref.dtype)          # lane-dense store (F % 128 == 0)


# ---------------------------------------------------------------------------
# Spectral norm estimate: one power-iteration step (num_svs=1, num_itrs=1,
# eval-time: u buffer not updated).  Tiny (1 x F) vec-mat products -> plain
# JAX glue, computed once up front (independent of z).
# ---------------------------------------------------------------------------
def spectral_sigma(w, u, eps=1e-12):
    # w: (out, in), u: (1, out)  -- mirrors power_iteration() in the module.
    v = u @ w                                                       # (1, in)
    v = v / jnp.maximum(jnp.linalg.norm(v, axis=1, keepdims=True), eps)
    u_new = v @ w.T                                                 # (1, out)
    u_new = u_new / jnp.maximum(jnp.linalg.norm(u_new, axis=1, keepdims=True), eps)
    sigma = jnp.squeeze((v @ w.T) @ u_new.T)                        # scalar sv
    return sigma


# ---------------------------------------------------------------------------
# StyleBlock forward: one fused pallas_call for all n_mlp SN-Linear+ReLU layers.
# ---------------------------------------------------------------------------
@jax.jit
def style_block_forward(z, weights, biases, us):
    eps = 1e-12
    n_mlp = len(weights)
    B, in_f = z.shape
    out_f = weights[0].shape[0]

    # Padding: features -> multiple of 128 (lane-dense stores),
    #          batch    -> multiple of 8  (full sublanes).  Batch tile capped
    #          at 128 so large batches still give several "parallel" grid steps.
    F = _round_up(max(in_f, out_f), 128)
    TB = 128 if B > 128 else _round_up(B, 8)
    B_pad = _round_up(B, TB)

    # ---- precompute all 1/sigma (independent of z), eps-guarded ----------
    inv_sigmas = jnp.stack(
        [1.0 / jnp.maximum(spectral_sigma(w, u, eps), eps)
         for w, u in zip(weights, us)]).astype(jnp.float32)         # (n_mlp,)

    # ---- stack + zero-pad parameters; weights pre-transposed to (in, out) --
    w_stack = jnp.stack([
        jnp.zeros((F, F), jnp.float32)
        .at[:w.shape[1], :w.shape[0]].set(w.T.astype(jnp.float32))
        for w in weights])                                          # (n_mlp,F,F)
    b_stack = jnp.stack([
        jnp.zeros((1, F), jnp.float32)
        .at[0, :b.shape[0]].set(b.astype(jnp.float32))
        for b in biases])                                           # (n_mlp,1,F)

    z_pad = jnp.zeros((B_pad, F), jnp.float32).at[:B, :in_f].set(
        z.astype(jnp.float32))

    out = pl.pallas_call(
        functools.partial(_style_block_kernel, n_mlp),
        out_shape=jax.ShapeDtypeStruct((B_pad, F), z.dtype),
        grid_spec=pltpu.PrefetchScalarGridSpec(
            num_scalar_prefetch=1,                 # inv_sigmas -> SMEM
            grid=(B_pad // TB,),                   # tile over batch only
            in_specs=[
                pl.BlockSpec((TB, F), lambda i, s: (i, 0)),            # z
                pl.BlockSpec((n_mlp, F, F), lambda i, s: (0, 0, 0)),   # W.T stack
                pl.BlockSpec((n_mlp, 1, F), lambda i, s: (0, 0, 0)),   # b stack
            ],
            out_specs=pl.BlockSpec((TB, F), lambda i, s: (i, 0)),
        ),
        compiler_params=pltpu.CompilerParams(
            dimension_semantics=("parallel",)),    # v7x: shard batch on 2 TCs
    )(inv_sigmas, z_pad, w_stack, b_stack)

    return out[:B, :out_f]


# Pure-JAX reference (no Pallas, no padding) for a correctness check.
def style_block_ref(z, weights, biases, us):
    for w, b, u in zip(weights, biases, us):
        sigma = spectral_sigma(w, u)
        z = jnp.maximum(z @ (w / sigma).T + b, 0.0)
    return z


if __name__ == "__main__":
    # Small shapes consistent with the module: batch=8, input_size=32,
    # output_size=32, n_mlp=4 layers.
    B, IN, OUT, N_MLP = 8, 32, 32, 4

    key = jax.random.PRNGKey(0)
    weights, biases, us = [], [], []
    fan_ins = [IN] + [OUT] * (N_MLP - 1)
    for fan_in in fan_ins:
        key, kw, kb, ku = jax.random.split(key, 4)
        bound = 1.0 / (fan_in ** 0.5)
        weights.append(
            jax.random.uniform(kw, (OUT, fan_in), jnp.float32, -bound, bound))
        biases.append(
            jax.random.uniform(kb, (OUT,), jnp.float32, -bound, bound))
        us.append(jax.random.normal(ku, (1, OUT), jnp.float32))  # SN `u` buffer

    key, kz = jax.random.split(key)
    z = jax.random.normal(kz, (B, IN), jnp.float32)

    out = style_block_forward(z, weights, biases, us)
    out = jax.block_until_ready(out)

    ref = style_block_ref(z, weights, biases, us)
    assert out.shape == (B, OUT)
    assert jnp.allclose(out, ref, atol=1e-5, rtol=1e-5), "mismatch vs reference"

    print("KERNEL_OK")
</pallas_src>

<mosaic_0001>
module attributes {stable_mosaic.version = 11 : i64} {
  func.func @_style_block_kernel(%arg0: i32, %arg1: memref<4xf32, #tpu.memory_space<smem>>, %arg2: memref<8x128xf32, #tpu.memory_space<vmem>>, %arg3: memref<4x128x128xf32, #tpu.memory_space<vmem>>, %arg4: memref<4x1x128xf32, #tpu.memory_space<vmem>>, %arg5: memref<8x128xf32, #tpu.memory_space<vmem>>) attributes {dimension_semantics = [#tpu.dimension_semantics<parallel>], iteration_bounds = array<i64: 1>, scalar_prefetch = 1 : i64, scratch_operands = 0 : i64, tpu.core_type = #tpu.core_type<tc>, window_params = [{transform_indices = @transform_0, window_bounds = array<i64: 8, 128>}, {pipeline_mode = #tpu.pipeline_mode<synchronous>, transform_indices = @transform_1, window_bounds = array<i64: 4, 128, 128>}, {pipeline_mode = #tpu.pipeline_mode<synchronous>, transform_indices = @transform_2, window_bounds = array<i64: 4, 1, 128>}, {transform_indices = @transform_3, window_bounds = array<i64: 8, 128>}]} {
    %c0 = arith.constant 0 : index
    %c0_0 = arith.constant 0 : index
    %0 = vector.load %arg2[%c0, %c0_0] : memref<8x128xf32, #tpu.memory_space<vmem>>, vector<8x128xf32>
    %c0_1 = arith.constant 0 : index
    %c0_2 = arith.constant 0 : index
    %c0_3 = arith.constant 0 : index
    %1 = vector.load %arg3[%c0_1, %c0_2, %c0_3] : memref<4x128x128xf32, #tpu.memory_space<vmem>>, vector<1x128x128xf32>
    %2 = vector.shape_cast %1 : vector<1x128x128xf32> to vector<128x128xf32>
    %cst = arith.constant dense<0.000000e+00> : vector<8x128xf32>
    %3 = tpu.matmul %0, %2, %cst {dimension_numbers = #tpu.dot_dimension_numbers<[1], [0], [0], [1], [0, 0, 1, 1], [], []>} : vector<8x128xf32>, vector<128x128xf32>, vector<8x128xf32> -> vector<8x128xf32>
    %c0_4 = arith.constant 0 : index
    %4 = memref.load %arg1[%c0_4] : memref<4xf32, #tpu.memory_space<smem>>
    %5 = vector.broadcast %4 : f32 to vector<8x128xf32>
    %6 = arith.mulf %3, %5 : vector<8x128xf32>
    %c0_5 = arith.constant 0 : index
    %c0_6 = arith.constant 0 : index
    %c0_7 = arith.constant 0 : index
    %7 = vector.load %arg4[%c0_5, %c0_6, %c0_7] : memref<4x1x128xf32, #tpu.memory_space<vmem>>, vector<1x1x128xf32>
    %8 = vector.shape_cast %7 : vector<1x1x128xf32> to vector<1x128xf32>
    %9 = vector.broadcast %8 : vector<1x128xf32> to vector<8x128xf32>
    %10 = arith.addf %6, %9 : vector<8x128xf32>
    %cst_8 = arith.constant 0.000000e+00 : f32
    %11 = vector.broadcast %cst_8 : f32 to vector<8x128xf32>
    %12 = arith.maximumf %10, %11 : vector<8x128xf32>
    %c1 = arith.constant 1 : index
    %c0_9 = arith.constant 0 : index
    %c0_10 = arith.constant 0 : index
    %13 = vector.load %arg3[%c1, %c0_9, %c0_10] : memref<4x128x128xf32, #tpu.memory_space<vmem>>, vector<1x128x128xf32>
    %14 = vector.shape_cast %13 : vector<1x128x128xf32> to vector<128x128xf32>
    %cst_11 = arith.constant dense<0.000000e+00> : vector<8x128xf32>
    %15 = tpu.matmul %12, %14, %cst_11 {dimension_numbers = #tpu.dot_dimension_numbers<[1], [0], [0], [1], [0, 0, 1, 1], [], []>} : vector<8x128xf32>, vector<128x128xf32>, vector<8x128xf32> -> vector<8x128xf32>
    %c1_12 = arith.constant 1 : index
    %16 = memref.load %arg1[%c1_12] : memref<4xf32, #tpu.memory_space<smem>>
    %17 = vector.broadcast %16 : f32 to vector<8x128xf32>
    %18 = arith.mulf %15, %17 : vector<8x128xf32>
    %c1_13 = arith.constant 1 : index
    %c0_14 = arith.constant 0 : index
    %c0_15 = arith.constant 0 : index
    %19 = vector.load %arg4[%c1_13, %c0_14, %c0_15] : memref<4x1x128xf32, #tpu.memory_space<vmem>>, vector<1x1x128xf32>
    %20 = vector.shape_cast %19 : vector<1x1x128xf32> to vector<1x128xf32>
    %21 = vector.broadcast %20 : vector<1x128xf32> to vector<8x128xf32>
    %22 = arith.addf %18, %21 : vector<8x128xf32>
    %cst_16 = arith.constant 0.000000e+00 : f32
    %23 = vector.broadcast %cst_16 : f32 to vector<8x128xf32>
    %24 = arith.maximumf %22, %23 : vector<8x128xf32>
    %c2 = arith.constant 2 : index
    %c0_17 = arith.constant 0 : index
    %c0_18 = arith.constant 0 : index
    %25 = vector.load %arg3[%c2, %c0_17, %c0_18] : memref<4x128x128xf32, #tpu.memory_space<vmem>>, vector<1x128x128xf32>
    %26 = vector.shape_cast %25 : vector<1x128x128xf32> to vector<128x128xf32>
    %cst_19 = arith.constant dense<0.000000e+00> : vector<8x128xf32>
    %27 = tpu.matmul %24, %26, %cst_19 {dimension_numbers = #tpu.dot_dimension_numbers<[1], [0], [0], [1], [0, 0, 1, 1], [], []>} : vector<8x128xf32>, vector<128x128xf32>, vector<8x128xf32> -> vector<8x128xf32>
    %c2_20 = arith.constant 2 : index
    %28 = memref.load %arg1[%c2_20] : memref<4xf32, #tpu.memory_space<smem>>
    %29 = vector.broadcast %28 : f32 to vector<8x128xf32>
    %30 = arith.mulf %27, %29 : vector<8x128xf32>
    %c2_21 = arith.constant 2 : index
    %c0_22 = arith.constant 0 : index
    %c0_23 = arith.constant 0 : index
    %31 = vector.load %arg4[%c2_21, %c0_22, %c0_23] : memref<4x1x128xf32, #tpu.memory_space<vmem>>, vector<1x1x128xf32>
    %32 = vector.shape_cast %31 : vector<1x1x128xf32> to vector<1x128xf32>
    %33 = vector.broadcast %32 : vector<1x128xf32> to vector<8x128xf32>
    %34 = arith.addf %30, %33 : vector<8x128xf32>
    %cst_24 = arith.constant 0.000000e+00 : f32
    %35 = vector.broadcast %cst_24 : f32 to vector<8x128xf32>
    %36 = arith.maximumf %34, %35 : vector<8x128xf32>
    %c3 = arith.constant 3 : index
    %c0_25 = arith.constant 0 : index
    %c0_26 = arith.constant 0 : index
    %37 = vector.load %arg3[%c3, %c0_25, %c0_26] : memref<4x128x128xf32, #tpu.memory_space<vmem>>, vector<1x128x128xf32>
    %38 = vector.shape_cast %37 : vector<1x128x128xf32> to vector<128x128xf32>
    %cst_27 = arith.constant dense<0.000000e+00> : vector<8x128xf32>
    %39 = tpu.matmul %36, %38, %cst_27 {dimension_numbers = #tpu.dot_dimension_numbers<[1], [0], [0], [1], [0, 0, 1, 1], [], []>} : vector<8x128xf32>, vector<128x128xf32>, vector<8x128xf32> -> vector<8x128xf32>
    %c3_28 = arith.constant 3 : index
    %40 = memref.load %arg1[%c3_28] : memref<4xf32, #tpu.memory_space<smem>>
    %41 = vector.broadcast %40 : f32 to vector<8x128xf32>
    %42 = arith.mulf %39, %41 : vector<8x128xf32>
    %c3_29 = arith.constant 3 : index
    %c0_30 = arith.constant 0 : index
    %c0_31 = arith.constant 0 : index
    %43 = vector.load %arg4[%c3_29, %c0_30, %c0_31] : memref<4x1x128xf32, #tpu.memory_space<vmem>>, vector<1x1x128xf32>
    %44 = vector.shape_cast %43 : vector<1x1x128xf32> to vector<1x128xf32>
    %45 = vector.broadcast %44 : vector<1x128xf32> to vector<8x128xf32>
    %46 = arith.addf %42, %45 : vector<8x128xf32>
    %cst_32 = arith.constant 0.000000e+00 : f32
    %47 = vector.broadcast %cst_32 : f32 to vector<8x128xf32>
    %48 = arith.maximumf %46, %47 : vector<8x128xf32>
    %c0_33 = arith.constant 0 : index
    %c0_34 = arith.constant 0 : index
    %49 = vector.load %arg5[%c0_33, %c0_34] : memref<8x128xf32, #tpu.memory_space<vmem>>, vector<8x128xf32>
    tpu.vector_store %arg5[%c0_33, %c0_34], %48 {strides = array<i32>} : memref<8x128xf32, #tpu.memory_space<vmem>>, vector<8x128xf32>,
    return
  }
  func.func @transform_0(%arg0: i32, %arg1: memref<4xf32, #tpu.memory_space<smem>>) -> (i32, i32) {
    %c0_i32 = arith.constant 0 : i32
    %c0_i32_0 = arith.constant 0 : i32
    return %arg0, %c0_i32 : i32, i32
  }
  func.func @transform_1(%arg0: i32, %arg1: memref<4xf32, #tpu.memory_space<smem>>) -> (i32, i32, i32) {
    %c0_i32 = arith.constant 0 : i32
    %c0_i32_0 = arith.constant 0 : i32
    %c0_i32_1 = arith.constant 0 : i32
    %c0_i32_2 = arith.constant 0 : i32
    return %c0_i32, %c0_i32_0, %c0_i32_1 : i32, i32, i32
  }
  func.func @transform_2(%arg0: i32, %arg1: memref<4xf32, #tpu.memory_space<smem>>) -> (i32, i32, i32) {
    %c0_i32 = arith.constant 0 : i32
    %c0_i32_0 = arith.constant 0 : i32
    %c0_i32_1 = arith.constant 0 : i32
    %c0_i32_2 = arith.constant 0 : i32
    return %c0_i32, %c0_i32_0, %c0_i32_1 : i32, i32, i32
  }
  func.func @transform_3(%arg0: i32, %arg1: memref<4xf32, #tpu.memory_space<smem>>) -> (i32, i32) {
    %c0_i32 = arith.constant 0 : i32
    %c0_i32_0 = arith.constant 0 : i32
    return %arg0, %c0_i32 : i32, i32
  }
}

</mosaic_0001>

<bundles_post_ra>
// kernel: style_block_forward.1
= control target key start
LH: loop header
LB: loop body
LE: loop exit
PB: predicated region body
PF: predicated region fallthrough
CT: control target
= control target key end

     0   :  { %s328_s18 = smov [#allocation3]   ;;  %s568_s0 = inlined_call_operand.vmem [shape: f32[4], index: 0, kind: input, shape index: {}]   ;;  %s569_s1 = inlined_call_operand.vmem [shape: f32[8,128], index: 1, kind: input, shape index: {}]   ;;  %s570_s2 = inlined_call_operand.vmem [shape: f32[4,128,128], index: 2, kind: input, shape index: {}]   ;;  %s571_s3 = inlined_call_operand.vmem [shape: f32[4,1,128], index: 3, kind: input, shape index: {}]   ;;  %s572_s4 = inlined_call_operand.hbm [shape: f32[8,128], index: 4, kind: output, shape index: {}]  }
   0x1   :  { %s10_s17 = sshll.u32 %s568_s0, 4  ;;  %s11_s17 = int_to_ptr.vmem [resolvable:$true] %s10_s17 }
   0x2   :  { %13 = dma.vmem_to_smem %s11_s17, 16, %s328_s18, [#allocation2] }
   0x3   :  { %324 = dma.done.wait [#allocation2], 16 }
   0x4   :  { %325 = vsyncadd [#allocation2], 4294967280 }
   0x5   :  { %16 = sfence }
   0x6   :  { %v40_v0 = vld [vmem:[%s570_s2 + $0x78] sm:$0xff]  ;;  %v39_v1 = vld [vmem:[%s570_s2 + $0x70] sm:$0xff]  ;;  %v38_v2 = vld [vmem:[%s570_s2 + $0x68] sm:$0xff] }
   0x7   :  { %41 = vmatpush.msra.mxu0 %v40_v0  ;;  %v37_v3 = vld [vmem:[%s570_s2 + $0x60] sm:$0xff]  ;;  %v243_v4 = vld [vmem:[%s570_s2 + $0xf8] sm:$0xff]  ;;  %v242_v6 = vld [vmem:[%s570_s2 + $0xf0] sm:$0xff] }
   0x8   :  { %v36_v5 = vld [vmem:[%s570_s2 + $0x58] sm:$0xff]  ;;  %87 = vmatpush.msra.mxu1 %v243_v4  ;;  %v241_v7 = vld [vmem:[%s570_s2 + $0xe8] sm:$0xff]  ;;  %v35_v8 = vld [vmem:[%s570_s2 + $0x50] sm:$0xff] }
   0x9   :  { %42 = vmatpush.msra.mxu0 %v39_v1  ;;  %v34_v9 = vld [vmem:[%s570_s2 + $0x48] sm:$0xff]  ;;  %v240_v10 = vld [vmem:[%s570_s2 + $0xe0] sm:$0xff]  ;;  %v239_v11 = vld [vmem:[%s570_s2 + $0xd8] sm:$0xff] }
   0xa   :  { %88 = vmatpush.msra.mxu1 %v242_v6 }
   0xb   :  { %43 = vmatpush.msra.mxu0 %v38_v2 }
   0xc   :  { %89 = vmatpush.msra.mxu1 %v241_v7 }
   0xd   :  { %44 = vmatpush.msra.mxu0 %v37_v3 }
   0xf   :  { %45 = vmatpush.msra.mxu0 %v36_v5 }
  0x11   :  { %46 = vmatpush.msra.mxu0 %v35_v8 }
  0x12   :  { %17 = vsyncpa [#allocation5], 0  ;;  %v33_v12 = vld [vmem:[%s570_s2 + $0x40] sm:$0xff]  ;;  %90 = vmatpush.msra.mxu1 %v240_v10  ;;  %v238_v13 = vld [vmem:[%s570_s2 + $0xd0] sm:$0xff]  ;;  %s61_s21 = sld [smem:[#allocation3]]  ;;  %s219_s25 = sshll.u32 %s572_s4, 4  ;;  %s220_s25 = int_to_ptr.hbm [resolvable:$true] %s219_s25 }
  0x13   :  { %47 = vmatpush.msra.mxu0 %v34_v9  ;;  %v32_v14 = vld [vmem:[%s570_s2 + $0x38] sm:$0xff]  ;;  %v237_v15 = vld [vmem:[%s570_s2 + $0xc8] sm:$0xff]  ;;  %v31_v16 = vld [vmem:[%s570_s2 + $0x30] sm:$0xff]  ;;  %s244_s27 = sld [smem:[#allocation3 + $0x1]] }
  0x14   :  { %91 = vmatpush.msra.mxu1 %v239_v11  ;;  %v236_v17 = vld [vmem:[%s570_s2 + $0xc0] sm:$0xff]  ;;  %v30_v18 = vld [vmem:[%s570_s2 + $0x28] sm:$0xff]  ;;  %v235_v19 = vld [vmem:[%s570_s2 + $0xb8] sm:$0xff]  ;;  %s262_s17 = sld [smem:[#allocation3 + $0x2]] }
  0x15   :  { %48 = vmatpush.msra.mxu0 %v33_v12  ;;  %v29_v20 = vld [vmem:[%s570_s2 + $0x20] sm:$0xff]  ;;  %v234_v21 = vld [vmem:[%s570_s2 + $0xb0] sm:$0xff]  ;;  %v28_v22 = vld [vmem:[%s570_s2 + $0x18] sm:$0xff]  ;;  %s280_s20 = sld [smem:[#allocation3 + $0x3]] }
  0x16   :  { %92 = vmatpush.msra.mxu1 %v238_v13  ;;  %v233_v23 = vld [vmem:[%s570_s2 + $0xa8] sm:$0xff]  ;;  %v27_v24 = vld [vmem:[%s570_s2 + $0x10] sm:$0xff]  ;;  %v232_v25 = vld [vmem:[%s570_s2 + $0xa0] sm:$0xff] }
  0x17   :  { %49 = vmatpush.msra.mxu0 %v32_v14  ;;  %v26_v26 = vld [vmem:[%s570_s2 + $0x8] sm:$0xff]  ;;  %v25_v27 = vld [vmem:[%s570_s2] sm:$0xff]  ;;  %v231_v29 = vld [vmem:[%s570_s2 + $0x98] sm:$0xff] }
  0x18   :  { %93 = vmatpush.msra.mxu1 %v237_v15  ;;  %v24_v28 = vld [vmem:[%s569_s1] sm:$0xff]  ;;  %v230_v30 = vld [vmem:[%s570_s2 + $0x90] sm:$0xff]  ;;  %v229_v31 = vld [vmem:[%s570_s2 + $0x88] sm:$0xff]  ;;  %v62_v45 = vstv %s61_s21 }
  0x19   :  { %50 = vmatpush.msra.mxu0 %v31_v16  ;;  %v228_v32 = vld [vmem:[%s570_s2 + $0x80] sm:$0xff]  ;;  %v261_v33 = vld [vmem:[%s570_s2 + $0x178] sm:$0xff]  ;;  %v260_v34 = vld [vmem:[%s570_s2 + $0x170] sm:$0xff]  ;;  %v108_v3 = vstv %s244_s27 }
  0x1a   :  { %94 = vmatpush.msra.mxu1 %v236_v17  ;;  %134 = vmatpush.msra.mxu2 %v261_v33  ;;  %v259_v35 = vld [vmem:[%s570_s2 + $0x168] sm:$0xff]  ;;  %v258_v36 = vld [vmem:[%s570_s2 + $0x160] sm:$0xff]  ;;  %v257_v37 = vld [vmem:[%s570_s2 + $0x158] sm:$0xff]  ;;  %v155_v13 = vstv %s262_s17 }
  0x1b   :  { %51 = vmatpush.msra.mxu0 %v30_v18  ;;  %v256_v38 = vld [vmem:[%s570_s2 + $0x150] sm:$0xff]  ;;  %v255_v39 = vld [vmem:[%s570_s2 + $0x148] sm:$0xff]  ;;  %v254_v40 = vld [vmem:[%s570_s2 + $0x140] sm:$0xff] }
  0x1c   :  { %95 = vmatpush.msra.mxu1 %v235_v19  ;;  %135 = vmatpush.msra.mxu2 %v260_v34  ;;  %v253_v41 = vld [vmem:[%s570_s2 + $0x138] sm:$0xff]  ;;  %v252_v42 = vld [vmem:[%s570_s2 + $0x130] sm:$0xff]  ;;  %v251_v43 = vld [vmem:[%s570_s2 + $0x128] sm:$0xff]  ;;  %v202_v19 = vstv %s280_s20 }
  0x1d   :  { %52 = vmatpush.msra.mxu0 %v29_v20  ;;  %v250_v44 = vld [vmem:[%s570_s2 + $0x120] sm:$0xff]  ;;  %v249_v51 = vld [vmem:[%s570_s2 + $0x118] sm:$0xff]  ;;  %v248_v52 = vld [vmem:[%s570_s2 + $0x110] sm:$0xff] }
  0x1e   :  { %96 = vmatpush.msra.mxu1 %v234_v21  ;;  %136 = vmatpush.msra.mxu2 %v259_v35  ;;  %v284_v46 = vld [vmem:[%s571_s3] ss:$0 sm:$0xff]  ;;  %v247_v53 = vld [vmem:[%s570_s2 + $0x108] sm:$0xff]  ;;  %v279_v55 = vld [vmem:[%s570_s2 + $0x1f8] sm:$0xff] }
  0x1f   :  { %53 = vmatpush.msra.mxu0 %v28_v22  ;;  %v246_v54 = vld [vmem:[%s570_s2 + $0x100] sm:$0xff]  ;;  %v278_v56 = vld [vmem:[%s570_s2 + $0x1f0] sm:$0xff]  ;;  %181 = vmatpush.msra.mxu3 %v279_v55  ;;  %v277_v57 = vld [vmem:[%s570_s2 + $0x1e8] sm:$0xff] }
  0x20   :  { %97 = vmatpush.msra.mxu1 %v233_v23  ;;  %137 = vmatpush.msra.mxu2 %v258_v36  ;;  %v276_v58 = vld [vmem:[%s570_s2 + $0x1e0] sm:$0xff]  ;;  %v275_v59 = vld [vmem:[%s570_s2 + $0x1d8] sm:$0xff]  ;;  %v274_v60 = vld [vmem:[%s570_s2 + $0x1d0] sm:$0xff] }
  0x21   :  { %54 = vmatpush.msra.mxu0 %v27_v24  ;;  %182 = vmatpush.msra.mxu3 %v278_v56  ;;  %v273_v61 = vld [vmem:[%s570_s2 + $0x1c8] sm:$0xff]  ;;  %v272_v62 = vld [vmem:[%s570_s2 + $0x1c0] sm:$0xff]  ;;  %v271_v63 = vld [vmem:[%s570_s2 + $0x1b8] sm:$0xff] }
  0x22   :  { %98 = vmatpush.msra.mxu1 %v232_v25  ;;  %138 = vmatpush.msra.mxu2 %v257_v37  ;;  %v270_v0 = vld [vmem:[%s570_s2 + $0x1b0] sm:$0xff]  ;;  %v269_v1 = vld [vmem:[%s570_s2 + $0x1a8] sm:$0xff]  ;;  %v268_v2 = vld [vmem:[%s570_s2 + $0x1a0] sm:$0xff] }
  0x23   :  { %55 = vmatpush.msra.mxu0 %v26_v26  ;;  %183 = vmatpush.msra.mxu3 %v277_v57  ;;  %v285_v4 = vld [vmem:[%s571_s3 + $0x1] ss:$0 sm:$0xff]  ;;  %v267_v9 = vld [vmem:[%s570_s2 + $0x198] sm:$0xff]  ;;  %v266_v10 = vld [vmem:[%s570_s2 + $0x190] sm:$0xff] }
  0x24   :  { %99 = vmatpush.msra.mxu1 %v231_v29  ;;  %139 = vmatpush.msra.mxu2 %v256_v38  ;;  %v265_v11 = vld [vmem:[%s570_s2 + $0x188] sm:$0xff]  ;;  %v264_v12 = vld [vmem:[%s570_s2 + $0x180] sm:$0xff]  ;;  %s329_s2 = smov [#allocation4]  }
  0x25   :  { %56 = vmatpush.msra.mxu0 %v25_v27  ;;  %184 = vmatpush.msra.mxu3 %v276_v58  ;;  %v286_v14 = vld [vmem:[%s571_s3 + $0x2] ss:$0 sm:$0xff]  ;;  %v287_v20 = vld [vmem:[%s571_s3 + $0x3] ss:$0 sm:$0xff]  ;;  %s217_s23 = sshll.u32 %s329_s2, 4  ;;  %s218_s23 = int_to_ptr.vmem [resolvable:$true] %s217_s23 }
  0x26   :  { %57 = vmatmul.f32.vlgmr.msra.gmra.mxu0 %v24_v28  ;;  %100 = vmatpush.msra.mxu1 %v230_v30 }
  0x27   :  { %140 = vmatpush.msra.mxu2 %v255_v39  ;;  %185 = vmatpush.msra.mxu3 %v275_v59 }
  0x28   :  { %101 = vmatpush.msra.mxu1 %v229_v31 }
  0x29   :  { %141 = vmatpush.msra.mxu2 %v254_v40  ;;  %186 = vmatpush.msra.mxu3 %v274_v60 }
  0x2a   :  { %102 = vmatpush.msra.mxu1 %v228_v32 }
  0x2b   :  { %142 = vmatpush.msra.mxu2 %v253_v41  ;;  %187 = vmatpush.msra.mxu3 %v273_v61 }
  0x2d   :  { %143 = vmatpush.msra.mxu2 %v252_v42  ;;  %188 = vmatpush.msra.mxu3 %v272_v62 }
  0x2f   :  { %144 = vmatpush.msra.mxu2 %v251_v43  ;;  %189 = vmatpush.msra.mxu3 %v271_v63 }
  0x31   :  { %145 = vmatpush.msra.mxu2 %v250_v44  ;;  %190 = vmatpush.msra.mxu3 %v270_v0 }
  0x33   :  { %146 = vmatpush.msra.mxu2 %v249_v51  ;;  %191 = vmatpush.msra.mxu3 %v269_v1 }
  0x35   :  { %147 = vmatpush.msra.mxu2 %v248_v52  ;;  %192 = vmatpush.msra.mxu3 %v268_v2 }
  0x37   :  { %148 = vmatpush.msra.mxu2 %v247_v53  ;;  %193 = vmatpush.msra.mxu3 %v267_v9 }
  0x39   :  { %149 = vmatpush.msra.mxu2 %v246_v54  ;;  %194 = vmatpush.msra.mxu3 %v266_v10 }
  0x3b   :  { %195 = vmatpush.msra.mxu3 %v265_v11 }
  0x3d   :  { %196 = vmatpush.msra.mxu3 %v264_v12 }
  0xa3   :  { %v58_v47 = vpop.f32.mrf.mxu0 }
  0xa4   :  { %v63_v48 = vmul.f32 %v62_v45, %v58_v47 }
  0xa6   :  { %v68_v49 = vadd.f32 %v284_v46, %v63_v48 }
  0xa8   :  { %v69_v50 = vmax.f32 %v68_v49, 0.0 }
  0xaa   :  { %103 = vmatmul.f32.vlgmr.msra.gmra.mxu1 %v69_v50 }
 0x127   :  { %v104_v5 = vpop.f32.mrf.mxu1 }
 0x128   :  { %v109_v6 = vmul.f32 %v108_v3, %v104_v5 }
 0x12a   :  { %v115_v7 = vadd.f32 %v285_v4, %v109_v6 }
 0x12c   :  { %v116_v8 = vmax.f32 %v115_v7, 0.0 }
 0x12e   :  { %150 = vmatmul.f32.vlgmr.msra.gmra.mxu2 %v116_v8 }
 0x1b1   :  { %v151_v15 = vpop.f32.mrf.mxu2 }
 0x1b2   :  { %v156_v16 = vmul.f32 %v155_v13, %v151_v15 }
 0x1b4   :  { %v162_v17 = vadd.f32 %v286_v14, %v156_v16 }
 0x1b6   :  { %v163_v18 = vmax.f32 %v162_v17, 0.0 }
 0x1b8   :  { %197 = vmatmul.f32.vlgmr.msra.gmra.mxu3 %v163_v18 }
 0x23b   :  { %v198_v21 = vpop.f32.mrf.mxu3 }
 0x23c   :  { %v203_v22 = vmul.f32 %v202_v19, %v198_v21 }
 0x23e   :  { %v209_v23 = vadd.f32 %v287_v20, %v203_v22 }
 0x240   :  { %v210_v24 = vmax.f32 %v209_v23, 0.0 }
 0x242   :  { %211 = vst [vmem:[#allocation4] sm:$0xff] %v210_v24 }
 0x243   :  { %222 = dma.vmem_to_hbm [thread:$0]  %s218_s23, 128, %s220_s25, [#allocation5]  }
 0x244   :  { %326 = dma.done.wait [#allocation5], 128  }
 0x245   :  { %327 = vsyncadd [#allocation5], 4294967168 }
 0x246   :  { %227 = vsyncpa [#allocation5], 1 }

</bundles_post_ra>
